<compile_context>
chip_gen: v6e
topology: v6e:2x2x1
jax: 0.10.0
libtpu: 0.0.40
codegen_flags: <defaults>
</compile_context>

<pallas_src>
import jax
import jax.numpy as jnp
from jax.experimental import pallas as pl
from jax.experimental.pallas import tpu as pltpu


def gcn_fused_kernel(x_ref, emb_ref, lap_ref, w1x_ref, w1e_ref, b1_ref,
                     w2bd_ref, b2_ref, mean_ref, var_ref,
                     lap_bd_ref, lap_last_ref):
    """Full 2-layer GCN forward + log_softmax + sample var/mean in one step.

    x_ref    : [B, N, F0]      raw node features
    emb_ref  : [B, N, E]       normalized embedding (concat partner of x)
    lap_ref  : [B, N, N]       graph Laplacian / normalized adjacency
    w1x_ref  : [F0, S*H]       layer-0 weights (x rows), sample axis in lanes
    w1e_ref  : [E,  S*H]       layer-0 weights (emb rows), sample axis in lanes
    b1_ref   : [1,  S*H]
    w2bd_ref : [S*H, S*C]      block-diagonal layer-1 weights
    b2_ref   : [1,  S*C]
    mean_ref : [B, C]          mean over samples of log_softmax(z)[:, -1, :]
    var_ref  : [B, C]          variance (ddof=0) over samples
    lap_bd_ref   : [B*N, B*N]  scratch: block-diagonal Laplacian
    lap_last_ref : [B,  B*N]   scratch: block-diagonal last row per graph
    """
    B, N, F0 = x_ref.shape
    E = emb_ref.shape[-1]
    BN = B * N
    SH = w1e_ref.shape[-1]
    C = mean_ref.shape[-1]
    S = w2bd_ref.shape[-1] // C
    inv_s = 1.0 / S

    # ---- block-diagonal Laplacian (+ its per-graph last rows) in scratch ----
    # Two static sub-tile writes each -> ONE MXU pass per aggregation instead
    # of B batched degenerate passes.
    lap_bd_ref[...] = jnp.zeros_like(lap_bd_ref)
    lap_last_ref[...] = jnp.zeros_like(lap_last_ref)
    for b in range(B):                                       # static (B = 2)
        lap_bd_ref[b * N:(b + 1) * N, b * N:(b + 1) * N] = lap_ref[b]
        lap_last_ref[b:b + 1, b * N:(b + 1) * N] = lap_ref[b, N - 1:N, :]

    # ---- layer 0 feature transform -------------------------------------------
    # MXU handles the deep (K=E=64) embedding contraction; the shallow K=F0=4
    # x contraction is 4 VPU broadcast-FMAs folded into the same accumulator.
    e2 = emb_ref[...].reshape(BN, E)
    t = jnp.dot(e2, w1e_ref[...], preferred_element_type=jnp.float32)  # [BN,SH]
    x2 = x_ref[...].reshape(BN, F0)
    w1x = w1x_ref[...]
    for f in range(F0):                                      # static (F0 = 4)
        t = t + x2[:, f:f + 1] * w1x[f:f + 1, :]

    # ---- layer 0 graph aggregation + bias + ELU -------------------------------
    h = jnp.dot(lap_bd_ref[...], t,
                preferred_element_type=jnp.float32) + b1_ref[...]      # [BN,SH]
    # ELU(alpha=1); clamp so the masked positive branch can never overflow.
    h = jnp.where(h > 0, h, jnp.exp(jnp.minimum(h, 0.0)) - 1.0)

    # ---- layer 1: only the last node of each graph is ever read ---------------
    # (lap_last @ h) @ W2 == lap_last @ (h @ W2); b2 is node-independent.
    h_agg = jnp.dot(lap_last_ref[...], h,
                    preferred_element_type=jnp.float32)                # [B, SH]
    z = jnp.dot(h_agg, w2bd_ref[...],
                preferred_element_type=jnp.float32) + b2_ref[...]      # [B, SC]

    # ---- per-sample log_softmax + folded var/mean epilogue --------------------
    logps = []
    for s in range(S):                                       # static (S = 4)
        zs = z[:, s * C:(s + 1) * C]                         # [B, C] lane slice
        m = jnp.max(zs, axis=-1, keepdims=True)
        shifted = zs - m
        lse = jnp.log(jnp.sum(jnp.exp(shifted), axis=-1, keepdims=True))
        logps.append(shifted - lse)

    mean = logps[0]
    for s in range(1, S):
        mean = mean + logps[s]
    mean = mean * inv_s

    var = (logps[0] - mean) * (logps[0] - mean)
    for s in range(1, S):
        d = logps[s] - mean
        var = var + d * d
    var = var * inv_s                                        # ddof=0

    mean_ref[...] = mean
    var_ref[...] = var


def variational_batch_gcn_forward(lap, x, normalized_embedding,
                                  w1x_fold, w1e_fold, b1_sh, w2_shc, b2_sc,
                                  return_uncertainty=False):
    """Mirrors VariationalBatchGCN.forward (eval path, fixed per-sample weights).

    lap : [B, N, N], x : [B, N, F0], normalized_embedding : [B, N, E]
    w1x_fold : [F0, S*H]  layer-0 weights for the x rows, sample axis folded
                          into lanes (sampled directly in this layout).
    w1e_fold : [E,  S*H]  layer-0 weights for the embedding rows.
    b1_sh    : [S, H]
    w2_shc   : [S, H, C]
    b2_sc    : [S, C]
    Returns mean over samples of log_softmax(out)[:, -1, :] -> [B, C]
    (plus the unbiased=False variance if return_uncertainty).
    """
    lap = lap.astype(jnp.float32)
    x = x.astype(jnp.float32)
    emb = normalized_embedding.astype(jnp.float32)
    w1x_fold = w1x_fold.astype(jnp.float32)
    w1e_fold = w1e_fold.astype(jnp.float32)

    B, N, F0 = x.shape
    E = emb.shape[-1]
    S, H, C = w2_shc.shape
    SH, SC, BN = S * H, S * C, B * N
    assert w1x_fold.shape == (F0, SH) and w1e_fold.shape == (E, SH)

    # Pure reshapes (no transposes / no concatenate round trip).
    b1_fold = b1_sh.astype(jnp.float32).reshape(1, SH)
    b2_fold = b2_sc.astype(jnp.float32).reshape(1, SC)
    # Block-diagonal output head: one [S*H, S*C] matmul replaces S tiny heads.
    eye_s = jnp.eye(S, dtype=jnp.float32)
    w2_bd = jnp.einsum("shc,st->shtc", w2_shc.astype(jnp.float32),
                       eye_s).reshape(SH, SC)

    flops = (2 * BN * E * SH            # layer-0 embedding matmul (MXU)
             + 2 * BN * F0 * SH         # layer-0 x contraction (VPU FMAs)
             + 2 * BN * BN * SH         # layer-0 block-diag aggregation
             + 2 * B * BN * SH          # layer-1 last-row aggregation
             + 2 * B * SH * SC)         # block-diagonal output head
    transcendentals = BN * SH + B * S * C + B * S
    bytes_accessed = 4 * (x.size + emb.size + lap.size + w1x_fold.size
                          + w1e_fold.size + b1_fold.size + w2_bd.size
                          + b2_fold.size + 2 * B * C)

    vmem = pltpu.MemorySpace.VMEM
    mean, var = pl.pallas_call(
        gcn_fused_kernel,
        out_shape=(jax.ShapeDtypeStruct((B, C), jnp.float32),
                   jax.ShapeDtypeStruct((B, C), jnp.float32)),
        # No grid: whole problem (~60 KB) lives in VMEM, no pipelining, no
        # double buffering, no per-step overhead.
        in_specs=[pl.BlockSpec(memory_space=vmem)] * 8,
        out_specs=(pl.BlockSpec(memory_space=vmem),
                   pl.BlockSpec(memory_space=vmem)),
        scratch_shapes=[pltpu.VMEM((BN, BN), jnp.float32),   # block-diag lap
                        pltpu.VMEM((B, BN), jnp.float32)],   # last rows
        cost_estimate=pl.CostEstimate(flops=flops,
                                      transcendentals=transcendentals,
                                      bytes_accessed=bytes_accessed),
    )(x, emb, lap, w1x_fold, w1e_fold, b1_fold, w2_bd, b2_fold)

    if return_uncertainty:
        return mean, var
    return mean


if __name__ == "__main__":
    key = jax.random.PRNGKey(0)
    keys = jax.random.split(key, 12)

    # n_units = [68, 32, 8]: input dim = 4 raw features + 64-dim embedding.
    B, N, F0 = 2, 16, 4
    EMB_DIM = 64
    Fin, H, C = F0 + EMB_DIM, 32, 8
    S = 4                                   # eval path -> test_samples = 4

    # ---- inputs --------------------------------------------------------------
    # Row-normalized (adjacency + I) as the "lap" input.
    adj = jax.random.uniform(keys[0], (B, N, N), dtype=jnp.float32)
    adj = 0.5 * (adj + jnp.swapaxes(adj, 1, 2)) + jnp.eye(N, dtype=jnp.float32)
    lap = adj / jnp.sum(adj, axis=-1, keepdims=True)

    x = jax.random.normal(keys[1], (B, N, F0), dtype=jnp.float32)

    # nn.Embedding(1790, 64) lookup + L2-normalize -> "normalized_embedding"
    emb_table = 0.1 * jax.random.normal(keys[2], (1790, EMB_DIM),
                                        dtype=jnp.float32)
    node_ids = jax.random.randint(keys[3], (B, N), 0, 1790)
    emb = emb_table[node_ids]
    emb = emb / (jnp.linalg.norm(emb, axis=-1, keepdims=True) + 1e-12)

    # ---- variational parameters, sampled directly in the folded layouts ------
    # TODO(synk): VariationalBatchGraphConvolution source not provided; using
    # standard Gaussian-reparameterized GCN layers: W_s = mu + exp(log_sig)*eps.
    w1x_mu = jax.random.normal(keys[4], (F0, H), jnp.float32) / jnp.sqrt(Fin)
    w1e_mu = jax.random.normal(keys[5], (EMB_DIM, H), jnp.float32) / jnp.sqrt(Fin)
    w2_mu = jax.random.normal(keys[6], (H, C), jnp.float32) / jnp.sqrt(H)
    log_sig = jnp.float32(-5.0)
    sig = jnp.exp(log_sig)

    # eps drawn in (rows, S, H) layout so folding to [rows, S*H] is reshape-only.
    w1x_fold = (w1x_mu[:, None, :] + sig * jax.random.normal(
        keys[7], (F0, S, H), dtype=jnp.float32)).reshape(F0, S * H)
    w1e_fold = (w1e_mu[:, None, :] + sig * jax.random.normal(
        keys[8], (EMB_DIM, S, H), dtype=jnp.float32)).reshape(EMB_DIM, S * H)
    b1_sh = sig * jax.random.normal(keys[9], (S, H), dtype=jnp.float32)
    w2_shc = w2_mu[None] + sig * jax.random.normal(keys[10], (S, H, C),
                                                   dtype=jnp.float32)
    b2_sc = sig * jax.random.normal(keys[11], (S, C), dtype=jnp.float32)

    # ---- run kernel ----------------------------------------------------------
    fwd = jax.jit(variational_batch_gcn_forward,
                  static_argnames=("return_uncertainty",))
    result, result_var = fwd(lap, x, emb, w1x_fold, w1e_fold, b1_sh,
                             w2_shc, b2_sc, return_uncertainty=True)
    result = jax.block_until_ready(result)
    result_var = jax.block_until_ready(result_var)

    assert result.shape == (B, C) and result_var.shape == (B, C)
    assert bool(jnp.all(jnp.isfinite(result)))
    assert bool(jnp.all(jnp.isfinite(result_var)))
    assert bool(jnp.all(result_var >= -1e-7))

    # ---- pure-JAX reference (unfolded, per-sample loop) -----------------------
    def reference_forward(lap, x, emb, w1x_fold, w1e_fold, b1_sh, w2_shc, b2_sc):
        S, H, C = w2_shc.shape
        F0 = x.shape[-1]
        E = emb.shape[-1]
        w1_s = jnp.concatenate(
            [jnp.transpose(w1x_fold.reshape(F0, S, H), (1, 0, 2)),
             jnp.transpose(w1e_fold.reshape(E, S, H), (1, 0, 2))], axis=1)
        x_cat = jnp.concatenate((x, emb), axis=2)
        outs = []
        for s in range(S):
            h = jnp.einsum("bnf,fh->bnh", x_cat, w1_s[s], precision="highest")
            h = jnp.einsum("bmn,bnh->bmh", lap, h, precision="highest") + b1_sh[s]
            h = jnp.where(h > 0, h, jnp.exp(jnp.minimum(h, 0.0)) - 1.0)
            z = jnp.einsum("bnh,hc->bnc", h, w2_shc[s], precision="highest")
            z = jnp.einsum("bmn,bnc->bmc", lap, z, precision="highest") + b2_sc[s]
            outs.append(jax.nn.log_softmax(z, axis=-1)[:, -1, :])
        stacked = jnp.stack(outs, axis=0)
        return jnp.mean(stacked, axis=0), jnp.var(stacked, axis=0, ddof=0)

    ref_mean, ref_var = reference_forward(lap, x, emb, w1x_fold, w1e_fold,
                                          b1_sh, w2_shc, b2_sc)
    ref_mean = jax.block_until_ready(ref_mean)
    ref_var = jax.block_until_ready(ref_var)

    assert bool(jnp.allclose(result, ref_mean, atol=5e-3, rtol=5e-3))
    assert bool(jnp.allclose(result_var, ref_var, atol=1e-4))

    print("KERNEL_OK")
</pallas_src>

<mosaic_0001>
module attributes {stable_mosaic.version = 11 : i64} {
  func.func @gcn_fused_kernel(%arg0: memref<2x16x4xf32, #tpu.memory_space<vmem>>, %arg1: memref<2x16x64xf32, #tpu.memory_space<vmem>>, %arg2: memref<2x16x16xf32, #tpu.memory_space<vmem>>, %arg3: memref<4x128xf32, #tpu.memory_space<vmem>>, %arg4: memref<64x128xf32, #tpu.memory_space<vmem>>, %arg5: memref<1x128xf32, #tpu.memory_space<vmem>>, %arg6: memref<128x32xf32, #tpu.memory_space<vmem>>, %arg7: memref<1x32xf32, #tpu.memory_space<vmem>>, %arg8: memref<2x8xf32, #tpu.memory_space<vmem>>, %arg9: memref<2x8xf32, #tpu.memory_space<vmem>>, %arg10: memref<32x32xf32, #tpu.memory_space<vmem>>, %arg11: memref<2x32xf32, #tpu.memory_space<vmem>>) attributes {dimension_semantics = [], scalar_prefetch = 0 : i64, scratch_operands = 2 : i64, tpu.core_type = #tpu.core_type<tc>} {
    %cst = arith.constant 0.000000e+00 : f32
    %0 = vector.broadcast %cst : f32 to vector<32x32xf32>
    %c0 = arith.constant 0 : index
    %c0_0 = arith.constant 0 : index
    %1 = vector.load %arg10[%c0, %c0_0] : memref<32x32xf32, #tpu.memory_space<vmem>>, vector<32x32xf32>
    tpu.vector_store %arg10[%c0, %c0_0], %0 {strides = array<i32>} : memref<32x32xf32, #tpu.memory_space<vmem>>, vector<32x32xf32>,
    %cst_1 = arith.constant 0.000000e+00 : f32
    %2 = vector.broadcast %cst_1 : f32 to vector<2x32xf32>
    %c0_2 = arith.constant 0 : index
    %c0_3 = arith.constant 0 : index
    %3 = vector.load %arg11[%c0_2, %c0_3] : memref<2x32xf32, #tpu.memory_space<vmem>>, vector<2x32xf32>
    tpu.vector_store %arg11[%c0_2, %c0_3], %2 {strides = array<i32>} : memref<2x32xf32, #tpu.memory_space<vmem>>, vector<2x32xf32>,
    %c0_4 = arith.constant 0 : index
    %c0_5 = arith.constant 0 : index
    %c0_6 = arith.constant 0 : index
    %4 = vector.load %arg2[%c0_4, %c0_5, %c0_6] : memref<2x16x16xf32, #tpu.memory_space<vmem>>, vector<1x16x16xf32>
    %5 = vector.shape_cast %4 : vector<1x16x16xf32> to vector<16x16xf32>
    %c0_7 = arith.constant 0 : index
    %c0_8 = arith.constant 0 : index
    %6 = vector.load %arg10[%c0_7, %c0_8] : memref<32x32xf32, #tpu.memory_space<vmem>>, vector<16x16xf32>
    tpu.vector_store %arg10[%c0_7, %c0_8], %5 {strides = array<i32>} : memref<32x32xf32, #tpu.memory_space<vmem>>, vector<16x16xf32>,
    %c0_9 = arith.constant 0 : index
    %c15 = arith.constant 15 : index
    %c0_10 = arith.constant 0 : index
    %7 = vector.load %arg2[%c0_9, %c15, %c0_10] : memref<2x16x16xf32, #tpu.memory_space<vmem>>, vector<1x1x16xf32>
    %8 = vector.shape_cast %7 : vector<1x1x16xf32> to vector<1x16xf32>
    %c0_11 = arith.constant 0 : index
    %c0_12 = arith.constant 0 : index
    %9 = vector.load %arg11[%c0_11, %c0_12] : memref<2x32xf32, #tpu.memory_space<vmem>>, vector<1x16xf32>
    tpu.vector_store %arg11[%c0_11, %c0_12], %8 {strides = array<i32>} : memref<2x32xf32, #tpu.memory_space<vmem>>, vector<1x16xf32>,
    %c1 = arith.constant 1 : index
    %c0_13 = arith.constant 0 : index
    %c0_14 = arith.constant 0 : index
    %10 = vector.load %arg2[%c1, %c0_13, %c0_14] : memref<2x16x16xf32, #tpu.memory_space<vmem>>, vector<1x16x16xf32>
    %11 = vector.shape_cast %10 : vector<1x16x16xf32> to vector<16x16xf32>
    %c16 = arith.constant 16 : index
    %c16_15 = arith.constant 16 : index
    %12 = vector.load %arg10[%c16, %c16_15] : memref<32x32xf32, #tpu.memory_space<vmem>>, vector<16x16xf32>
    tpu.vector_store %arg10[%c16, %c16_15], %11 {strides = array<i32>} : memref<32x32xf32, #tpu.memory_space<vmem>>, vector<16x16xf32>,
    %c1_16 = arith.constant 1 : index
    %c15_17 = arith.constant 15 : index
    %c0_18 = arith.constant 0 : index
    %13 = vector.load %arg2[%c1_16, %c15_17, %c0_18] : memref<2x16x16xf32, #tpu.memory_space<vmem>>, vector<1x1x16xf32>
    %14 = vector.shape_cast %13 : vector<1x1x16xf32> to vector<1x16xf32>
    %c1_19 = arith.constant 1 : index
    %c16_20 = arith.constant 16 : index
    %15 = vector.load %arg11[%c1_19, %c16_20] : memref<2x32xf32, #tpu.memory_space<vmem>>, vector<1x16xf32>
    tpu.vector_store %arg11[%c1_19, %c16_20], %14 {strides = array<i32>} : memref<2x32xf32, #tpu.memory_space<vmem>>, vector<1x16xf32>,
    %c0_21 = arith.constant 0 : index
    %c0_22 = arith.constant 0 : index
    %c0_23 = arith.constant 0 : index
    %16 = vector.load %arg1[%c0_21, %c0_22, %c0_23] : memref<2x16x64xf32, #tpu.memory_space<vmem>>, vector<2x16x64xf32>
    %17 = vector.shape_cast %16 : vector<2x16x64xf32> to vector<32x64xf32>
    %c0_24 = arith.constant 0 : index
    %c0_25 = arith.constant 0 : index
    %18 = vector.load %arg4[%c0_24, %c0_25] : memref<64x128xf32, #tpu.memory_space<vmem>>, vector<64x128xf32>
    %cst_26 = arith.constant dense<0.000000e+00> : vector<32x128xf32>
    %19 = tpu.matmul %17, %18, %cst_26 {dimension_numbers = #tpu.dot_dimension_numbers<[1], [0], [0], [1], [0, 0, 1, 1], [], []>} : vector<32x64xf32>, vector<64x128xf32>, vector<32x128xf32> -> vector<32x128xf32>
    %c0_27 = arith.constant 0 : index
    %c0_28 = arith.constant 0 : index
    %c0_29 = arith.constant 0 : index
    %20 = vector.load %arg0[%c0_27, %c0_28, %c0_29] : memref<2x16x4xf32, #tpu.memory_space<vmem>>, vector<2x16x4xf32>
    %21 = vector.shape_cast %20 : vector<2x16x4xf32> to vector<32x4xf32>
    %c0_30 = arith.constant 0 : index
    %c0_31 = arith.constant 0 : index
    %22 = vector.load %arg3[%c0_30, %c0_31] : memref<4x128xf32, #tpu.memory_space<vmem>>, vector<4x128xf32>
    %23 = vector.extract_strided_slice %21 {offsets = [0, 0], sizes = [32, 1], strides = [1, 1]} : vector<32x4xf32> to vector<32x1xf32>
    %24 = vector.extract_strided_slice %22 {offsets = [0, 0], sizes = [1, 128], strides = [1, 1]} : vector<4x128xf32> to vector<1x128xf32>
    %25 = vector.broadcast %23 : vector<32x1xf32> to vector<32x128xf32>
    %26 = vector.broadcast %24 : vector<1x128xf32> to vector<32x128xf32>
    %27 = arith.mulf %25, %26 : vector<32x128xf32>
    %28 = arith.addf %19, %27 : vector<32x128xf32>
    %29 = vector.extract_strided_slice %21 {offsets = [0, 1], sizes = [32, 1], strides = [1, 1]} : vector<32x4xf32> to vector<32x1xf32>
    %30 = vector.extract_strided_slice %22 {offsets = [1, 0], sizes = [1, 128], strides = [1, 1]} : vector<4x128xf32> to vector<1x128xf32>
    %31 = vector.broadcast %29 : vector<32x1xf32> to vector<32x128xf32>
    %32 = vector.broadcast %30 : vector<1x128xf32> to vector<32x128xf32>
    %33 = arith.mulf %31, %32 : vector<32x128xf32>
    %34 = arith.addf %28, %33 : vector<32x128xf32>
    %35 = vector.extract_strided_slice %21 {offsets = [0, 2], sizes = [32, 1], strides = [1, 1]} : vector<32x4xf32> to vector<32x1xf32>
    %36 = vector.extract_strided_slice %22 {offsets = [2, 0], sizes = [1, 128], strides = [1, 1]} : vector<4x128xf32> to vector<1x128xf32>
    %37 = vector.broadcast %35 : vector<32x1xf32> to vector<32x128xf32>
    %38 = vector.broadcast %36 : vector<1x128xf32> to vector<32x128xf32>
    %39 = arith.mulf %37, %38 : vector<32x128xf32>
    %40 = arith.addf %34, %39 : vector<32x128xf32>
    %41 = vector.extract_strided_slice %21 {offsets = [0, 3], sizes = [32, 1], strides = [1, 1]} : vector<32x4xf32> to vector<32x1xf32>
    %42 = vector.extract_strided_slice %22 {offsets = [3, 0], sizes = [1, 128], strides = [1, 1]} : vector<4x128xf32> to vector<1x128xf32>
    %43 = vector.broadcast %41 : vector<32x1xf32> to vector<32x128xf32>
    %44 = vector.broadcast %42 : vector<1x128xf32> to vector<32x128xf32>
    %45 = arith.mulf %43, %44 : vector<32x128xf32>
    %46 = arith.addf %40, %45 : vector<32x128xf32>
    %c0_32 = arith.constant 0 : index
    %c0_33 = arith.constant 0 : index
    %47 = vector.load %arg10[%c0_32, %c0_33] : memref<32x32xf32, #tpu.memory_space<vmem>>, vector<32x32xf32>
    %cst_34 = arith.constant dense<0.000000e+00> : vector<32x128xf32>
    %48 = tpu.matmul %47, %46, %cst_34 {dimension_numbers = #tpu.dot_dimension_numbers<[1], [0], [0], [1], [0, 0, 1, 1], [], []>} : vector<32x32xf32>, vector<32x128xf32>, vector<32x128xf32> -> vector<32x128xf32>
    %c0_35 = arith.constant 0 : index
    %c0_36 = arith.constant 0 : index
    %49 = vector.load %arg5[%c0_35, %c0_36] : memref<1x128xf32, #tpu.memory_space<vmem>>, vector<1x128xf32>
    %50 = vector.broadcast %49 : vector<1x128xf32> to vector<32x128xf32>
    %51 = arith.addf %48, %50 : vector<32x128xf32>
    %cst_37 = arith.constant 0.000000e+00 : f32
    %52 = vector.broadcast %cst_37 : f32 to vector<32x128xf32>
    %53 = arith.cmpf ogt, %51, %52 : vector<32x128xf32>
    %cst_38 = arith.constant 0.000000e+00 : f32
    %54 = vector.broadcast %cst_38 : f32 to vector<32x128xf32>
    %55 = arith.minimumf %51, %54 : vector<32x128xf32>
    %56 = math.exp %55 : vector<32x128xf32>
    %cst_39 = arith.constant 1.000000e+00 : f32
    %57 = vector.broadcast %cst_39 : f32 to vector<32x128xf32>
    %58 = arith.subf %56, %57 : vector<32x128xf32>
    %59 = arith.select %53, %51, %58 : vector<32x128xi1>, vector<32x128xf32>
    %c0_40 = arith.constant 0 : index
    %c0_41 = arith.constant 0 : index
    %60 = vector.load %arg11[%c0_40, %c0_41] : memref<2x32xf32, #tpu.memory_space<vmem>>, vector<2x32xf32>
    %cst_42 = arith.constant dense<0.000000e+00> : vector<2x128xf32>
    %61 = tpu.matmul %60, %59, %cst_42 {dimension_numbers = #tpu.dot_dimension_numbers<[1], [0], [0], [1], [0, 0, 1, 1], [], []>} : vector<2x32xf32>, vector<32x128xf32>, vector<2x128xf32> -> vector<2x128xf32>
    %c0_43 = arith.constant 0 : index
    %c0_44 = arith.constant 0 : index
    %62 = vector.load %arg6[%c0_43, %c0_44] : memref<128x32xf32, #tpu.memory_space<vmem>>, vector<128x32xf32>
    %cst_45 = arith.constant dense<0.000000e+00> : vector<2x32xf32>
    %63 = tpu.matmul %61, %62, %cst_45 {dimension_numbers = #tpu.dot_dimension_numbers<[1], [0], [0], [1], [0, 0, 1, 1], [], []>} : vector<2x128xf32>, vector<128x32xf32>, vector<2x32xf32> -> vector<2x32xf32>
    %c0_46 = arith.constant 0 : index
    %c0_47 = arith.constant 0 : index
    %64 = vector.load %arg7[%c0_46, %c0_47] : memref<1x32xf32, #tpu.memory_space<vmem>>, vector<1x32xf32>
    %65 = vector.broadcast %64 : vector<1x32xf32> to vector<2x32xf32>
    %66 = arith.addf %63, %65 : vector<2x32xf32>
    %67 = vector.extract_strided_slice %66 {offsets = [0, 0], sizes = [2, 8], strides = [1, 1]} : vector<2x32xf32> to vector<2x8xf32>
    %cst_48 = arith.constant dense<0xFF800000> : vector<2xf32>
    %68 = vector.multi_reduction <maximumf>, %67, %cst_48 [1] : vector<2x8xf32> to vector<2xf32>
    %69 = vector.shape_cast %68 : vector<2xf32> to vector<2x1xf32>
    %70 = vector.broadcast %69 : vector<2x1xf32> to vector<2x8xf32>
    %71 = arith.subf %67, %70 : vector<2x8xf32>
    %72 = math.exp %71 : vector<2x8xf32>
    %cst_49 = arith.constant dense<0.000000e+00> : vector<2xf32>
    %73 = vector.multi_reduction <add>, %72, %cst_49 [1] : vector<2x8xf32> to vector<2xf32>
    %74 = vector.shape_cast %73 : vector<2xf32> to vector<2x1xf32>
    %75 = math.log %74 : vector<2x1xf32>
    %76 = vector.broadcast %75 : vector<2x1xf32> to vector<2x8xf32>
    %77 = arith.subf %71, %76 : vector<2x8xf32>
    %78 = vector.extract_strided_slice %66 {offsets = [0, 8], sizes = [2, 8], strides = [1, 1]} : vector<2x32xf32> to vector<2x8xf32>
    %cst_50 = arith.constant dense<0xFF800000> : vector<2xf32>
    %79 = vector.multi_reduction <maximumf>, %78, %cst_50 [1] : vector<2x8xf32> to vector<2xf32>
    %80 = vector.shape_cast %79 : vector<2xf32> to vector<2x1xf32>
    %81 = vector.broadcast %80 : vector<2x1xf32> to vector<2x8xf32>
    %82 = arith.subf %78, %81 : vector<2x8xf32>
    %83 = math.exp %82 : vector<2x8xf32>
    %cst_51 = arith.constant dense<0.000000e+00> : vector<2xf32>
    %84 = vector.multi_reduction <add>, %83, %cst_51 [1] : vector<2x8xf32> to vector<2xf32>
    %85 = vector.shape_cast %84 : vector<2xf32> to vector<2x1xf32>
    %86 = math.log %85 : vector<2x1xf32>
    %87 = vector.broadcast %86 : vector<2x1xf32> to vector<2x8xf32>
    %88 = arith.subf %82, %87 : vector<2x8xf32>
    %89 = vector.extract_strided_slice %66 {offsets = [0, 16], sizes = [2, 8], strides = [1, 1]} : vector<2x32xf32> to vector<2x8xf32>
    %cst_52 = arith.constant dense<0xFF800000> : vector<2xf32>
    %90 = vector.multi_reduction <maximumf>, %89, %cst_52 [1] : vector<2x8xf32> to vector<2xf32>
    %91 = vector.shape_cast %90 : vector<2xf32> to vector<2x1xf32>
    %92 = vector.broadcast %91 : vector<2x1xf32> to vector<2x8xf32>
    %93 = arith.subf %89, %92 : vector<2x8xf32>
    %94 = math.exp %93 : vector<2x8xf32>
    %cst_53 = arith.constant dense<0.000000e+00> : vector<2xf32>
    %95 = vector.multi_reduction <add>, %94, %cst_53 [1] : vector<2x8xf32> to vector<2xf32>
    %96 = vector.shape_cast %95 : vector<2xf32> to vector<2x1xf32>
    %97 = math.log %96 : vector<2x1xf32>
    %98 = vector.broadcast %97 : vector<2x1xf32> to vector<2x8xf32>
    %99 = arith.subf %93, %98 : vector<2x8xf32>
    %100 = vector.extract_strided_slice %66 {offsets = [0, 24], sizes = [2, 8], strides = [1, 1]} : vector<2x32xf32> to vector<2x8xf32>
    %cst_54 = arith.constant dense<0xFF800000> : vector<2xf32>
    %101 = vector.multi_reduction <maximumf>, %100, %cst_54 [1] : vector<2x8xf32> to vector<2xf32>
    %102 = vector.shape_cast %101 : vector<2xf32> to vector<2x1xf32>
    %103 = vector.broadcast %102 : vector<2x1xf32> to vector<2x8xf32>
    %104 = arith.subf %100, %103 : vector<2x8xf32>
    %105 = math.exp %104 : vector<2x8xf32>
    %cst_55 = arith.constant dense<0.000000e+00> : vector<2xf32>
    %106 = vector.multi_reduction <add>, %105, %cst_55 [1] : vector<2x8xf32> to vector<2xf32>
    %107 = vector.shape_cast %106 : vector<2xf32> to vector<2x1xf32>
    %108 = math.log %107 : vector<2x1xf32>
    %109 = vector.broadcast %108 : vector<2x1xf32> to vector<2x8xf32>
    %110 = arith.subf %104, %109 : vector<2x8xf32>
    %111 = arith.addf %77, %88 : vector<2x8xf32>
    %112 = arith.addf %111, %99 : vector<2x8xf32>
    %113 = arith.addf %112, %110 : vector<2x8xf32>
    %cst_56 = arith.constant 2.500000e-01 : f32
    %114 = vector.broadcast %cst_56 : f32 to vector<2x8xf32>
    %115 = arith.mulf %113, %114 : vector<2x8xf32>
    %116 = arith.subf %77, %115 : vector<2x8xf32>
    %117 = arith.subf %77, %115 : vector<2x8xf32>
    %118 = arith.mulf %116, %117 : vector<2x8xf32>
    %119 = arith.subf %88, %115 : vector<2x8xf32>
    %120 = arith.mulf %119, %119 : vector<2x8xf32>
    %121 = arith.addf %118, %120 : vector<2x8xf32>
    %122 = arith.subf %99, %115 : vector<2x8xf32>
    %123 = arith.mulf %122, %122 : vector<2x8xf32>
    %124 = arith.addf %121, %123 : vector<2x8xf32>
    %125 = arith.subf %110, %115 : vector<2x8xf32>
    %126 = arith.mulf %125, %125 : vector<2x8xf32>
    %127 = arith.addf %124, %126 : vector<2x8xf32>
    %cst_57 = arith.constant 2.500000e-01 : f32
    %128 = vector.broadcast %cst_57 : f32 to vector<2x8xf32>
    %129 = arith.mulf %127, %128 : vector<2x8xf32>
    %c0_58 = arith.constant 0 : index
    %c0_59 = arith.constant 0 : index
    %130 = vector.load %arg8[%c0_58, %c0_59] : memref<2x8xf32, #tpu.memory_space<vmem>>, vector<2x8xf32>
    tpu.vector_store %arg8[%c0_58, %c0_59], %115 {strides = array<i32>} : memref<2x8xf32, #tpu.memory_space<vmem>>, vector<2x8xf32>,
    %c0_60 = arith.constant 0 : index
    %c0_61 = arith.constant 0 : index
    %131 = vector.load %arg9[%c0_60, %c0_61] : memref<2x8xf32, #tpu.memory_space<vmem>>, vector<2x8xf32>
    tpu.vector_store %arg9[%c0_60, %c0_61], %129 {strides = array<i32>} : memref<2x8xf32, #tpu.memory_space<vmem>>, vector<2x8xf32>,
    return
  }
}

</mosaic_0001>

<bundles_post_ra>
// kernel: variational_batch_gcn_forward.1
= control target key start
LH: loop header
LB: loop body
LE: loop exit
PB: predicated region body
PF: predicated region fallthrough
CT: control target
= control target key end

     0   :  { %15 = vsyncpa [#allocation5], 0  ;;  %vm114_vm0 = vcmask 523264   ;;  %v974_v2 = vmov 1   ;;  %v975_v5 = vmov 0   ;;  %s1227_s0 = inlined_call_operand.vmem [shape: f32[2,16,4], index: 0, kind: input, shape index: {}]   ;;  %s1228_s1 = inlined_call_operand.vmem [shape: f32[2,16,64], index: 1, kind: input, shape index: {}]   ;;  %s1229_s2 = inlined_call_operand.vmem [shape: f32[2,16,16], index: 2, kind: input, shape index: {}]   ;;  %s1230_s3 = inlined_call_operand.vmem [shape: f32[4,128], index: 3, kind: input, shape index: {}]   ;;  %s1231_s4 = inlined_call_operand.vmem [shape: f32[64,128], index: 4, kind: input, shape index: {}]   ;;  %s1232_s5 = inlined_call_operand.vmem [shape: f32[1,128], index: 5, kind: input, shape index: {}]   ;;  %s1233_s6 = inlined_call_operand.vmem [shape: f32[128,32], index: 6, kind: input, shape index: {}]   ;;  %s1234_s7 = inlined_call_operand.vmem [shape: f32[1,32], index: 7, kind: input, shape index: {}]   ;;  %s1235_s8 = inlined_call_operand.hbm [shape: f32[2,8], index: 8, kind: output, shape index: {0}]   ;;  %s1236_s9 = inlined_call_operand.hbm [shape: f32[2,8], index: 9, kind: output, shape index: {1}]  }
   0x1   :  { %v80_v0 = vld [vmem:[%s1231_s4 + $0x38] sm:$0xff]  ;;  %v79_v1 = vld [vmem:[%s1231_s4 + $0x30] sm:$0xff]  ;;  %896 = vset.pattern.permute.xlu1 %v974_v2  ;;  %v78_v3 = vld [vmem:[%s1231_s4 + $0x28] sm:$0xff]  ;;  %895 = vset.pattern.permute.xlu0 %v975_v5 }
   0x2   :  { %799 = vmatprep.subr.mxu1 %v80_v0  ;;  %v69_v4 = vld [vmem:[%s1228_s1] sm:$0xff]  ;;  %v84_v7 = vld [vmem:[%s1227_s0 + $0x18] sm:$0xff] }
   0x3   :  { %800 = vmatpush3.msra.mxu1 %v80_v0  ;;  %815 = vmatprep.mubr.msk.f32.mxu1 %vm114_vm0, %v69_v4  ;;  %v77_v6 = vld [vmem:[%s1231_s4 + $0x20] sm:$0xff]  ;;  %v76_v8 = vld [vmem:[%s1231_s4 + $0x18] sm:$0xff] }
   0x4   :  { %801 = vmatprep.subr.mxu1 %v79_v1  ;;  %225 = vperm.xlu1 %896, %v84_v7  }
   0x5   :  { %802 = vmatpush3.msra.mxu1 %v79_v1  ;;  %103 = vperm.xlu0 %895, %v84_v7  }
   0x6   :  { %803 = vmatprep.subr.mxu1 %v78_v3 }
   0x7   :  { %804 = vmatpush3.msra.mxu1 %v78_v3 }
   0x8   :  { %16 = vsyncpa [#allocation7], 0  ;;  %805 = vmatprep.subr.mxu1 %v77_v6  ;;  %v82_v9 = vld [vmem:[%s1227_s0 + $0x8] sm:$0xff]  ;;  %v75_v10 = vld [vmem:[%s1231_s4 + $0x10] sm:$0xff]  ;;  %897 = vset.pattern.permute.xlu1 %v975_v5  ;;  %v976_v15 = vmov 2   ;;  %v977_v19 = vmov 3   ;;  %v106_v45 = vlaneseq }
   0x9   :  { %806 = vmatpush3.msra.mxu1 %v77_v6  ;;  %v83_v11 = vld [vmem:[%s1227_s0 + $0x10] sm:$0xff]  ;;  %v74_v12 = vld [vmem:[%s1231_s4 + $0x8] sm:$0xff]  ;;  %93 = vperm.xlu1 %897, %v82_v9   ;;  %v73_v13 = vld [vmem:[%s1231_s4] sm:$0xff]  ;;  %vm33_vm1 = vcmask 261120   ;;  %v979_v22 = vmov 0.0   ;;  %vm42_vm2 = vcmask 130048  }
   0xa   :  { %807 = vmatprep.subr.mxu1 %v76_v8  ;;  %98 = vperm.xlu0 %895, %v83_v11   ;;  %v70_v14 = vld [vmem:[%s1228_s1 + $0x8] sm:$0xff]  ;;  %v71_v16 = vld [vmem:[%s1228_s1 + $0x10] sm:$0xff]  ;;  %v81_v17 = vld [vmem:[%s1227_s0] sm:$0xff]  ;;  %36 = vst.msk [vmem:[#allocation2 + $0x10] sm:$0xff] %vm33_vm1, %v979_v22  ;;  %vm59_vm3 = vcmask 261248   ;;  %v107_v46 = vshrl.u32 %v106_v45, 7 }
   0xb   :  { %808 = vmatpush3.msra.mxu1 %v76_v8  ;;  %v72_v18 = vld [vmem:[%s1228_s1 + $0x18] sm:$0xff]  ;;  %v739_v20 = vld [vmem:[%s1229_s2 + $0x10] sm:$0xff]  ;;  %s978_s1 = smov 16   ;;  %34 = vst.msk [vmem:[#allocation2] sm:$0xff] %vm33_vm1, %v979_v22  ;;  %35 = vst.msk [vmem:[#allocation2 + $0x8] sm:$0xff] %vm33_vm1, %v979_v22  ;;  %846 = vmatprep.subr.mxu0 %v979_v22  ;;  %vm67_vm4 = vcmask 254080  }
   0xc   :  { %809 = vmatprep.subr.mxu1 %v75_v10  ;;  %v740_v21 = vld [vmem:[%s1229_s2 + $0x18] sm:$0xff]  ;;  %37 = vst.msk [vmem:[#allocation2 + $0x18] sm:$0xff] %vm33_vm1, %v979_v22  ;;  %v40_v23 = vld [vmem:[%s1229_s2] sm:$0xff]  ;;  %v41_v24 = vld [vmem:[%s1229_s2 + $0x8] sm:$0xff]  ;;  %v108_v47 = vsub.s32 0, %v107_v46  ;;  %v230_v49 = vsub.s32 1, %v107_v46 }
   0xd   :  { %810 = vmatpush3.msra.mxu1 %v75_v10  ;;  %899 = vset.pattern.permute.xlu1 %v976_v15  ;;  %43 = vst.msk [vmem:[#allocation2] sm:$0xff] %vm42_vm2, %v40_v23  ;;  %44 = vst.msk [vmem:[#allocation2 + $0x8] sm:$0xff] %vm42_vm2, %v41_v24  ;;  %v741_v26 = vld [vmem:[%s1229_s2 + $0x1f] sm:$0x1]  ;;  %v85_v48 = vld [vmem:[%s1230_s3] sm:$0xf] }
   0xe   :  { %811 = vmatprep.subr.mxu1 %v74_v12  ;;  %253 = vperm.xlu1 %899, %v84_v7   ;;  %v109_v50 = vrot.slane %v85_v48, %v108_v47  ;;  %v258_v51 = vsub.s32 2, %v107_v46  ;;  %v286_v52 = vsub.s32 3, %v107_v46  ;;  %v231_v53 = vrot.slane %v85_v48, %v230_v49  ;;  %v506_v45 = vld [vmem:[%s1233_s6 + $0x20] sm:$0xff]  ;;  %v505_v46 = vld [vmem:[%s1233_s6 + $0x18] sm:$0xff]  ;;  %v504_v47 = vld [vmem:[%s1233_s6 + $0x10] sm:$0xff]  ;;  %s983_s18 = smov 104  }
   0xf   :  { %812 = vmatpush3.msra.mxu1 %v74_v12  ;;  %898 = vset.pattern.permute.xlu0 %v974_v2  ;;  %vm38_vm5 = vcmask 254976   ;;  %vm46_vm6 = vcmask 122880   ;;  %vm980_vm7 = vmmov 0   ;;  %v746_v49 = vld [vmem:[%s1232_s5] ss:$0 sm:$0xff]  ;;  %vm625_vm12 = vcmask 189568  }
  0x10   :  { %813 = vmatprep.subr.mxu1 %v73_v13  ;;  %221 = vperm.xlu0 %898, %v83_v11   ;;  %v259_v55 = vrot.slane %v85_v48, %v258_v51  ;;  %v287_v56 = vrot.slane %v85_v48, %v286_v52  ;;  %39 = vst.msk [vmem:[#allocation3] sm:$0x3] %vm38_vm5, %v979_v22  ;;  %v503_v48 = vld [vmem:[%s1233_s6 + $0x8] sm:$0xff]  ;;  %vm608_vm13 = vcmask 123968   ;;  %vm642_vm14 = vcmask 255168   ;;  %s984_s0 = smov 8  }
  0x11   :  { %814 = vmatpush3.msra.mxu1 %v73_v13  ;;  %878 = vmatprep.mubr.msk.f32.mxu0 %vm980_vm7, %v979_v22  ;;  %vm595_vm15 = vcmask 58368   ;;  %s985_s19 = smov 24   ;;  %s986_s20 = smov [#allocation4]  }
  0x12   :  { %816 = vmatmul.mubr.msk.f32.vlgmr.msra.gmra.mxu1 %vm114_vm0, %v70_v14  ;;  %900 = vset.pattern.permute.xlu1 %v975_v5  ;;  %s717_s21 = sshll.u32 %s986_s20, 4  ;;  %s718_s21 = int_to_ptr.vmem [resolvable:$true] %s717_s21 }
  0x13   :  { %818 = vmatprep.mubr.msk.f32.mxu1 %vm114_vm0, %v71_v16  ;;  %88 = vperm.xlu1 %900, %v81_v17   ;;  %s930_s22 = scalar_lea.vmem %s718_s21, 32  ;;  %p935_p1 = scmp.lt.s32.totalorder %s718_s21, %s718_s21 }
  0x14   :  { %217 = vperm.xlu0 %898, %v82_v9   ;;  %v296_v25 = vld [vmem:[#allocation2] sm:$0xff]  ;;  %p931_p0 = scmp.ne.s32.totalorder %s718_s21, %s930_s22  ;;  %p936_p2 = scmp.lt.s32.totalorder %s930_s22, %s930_s22 }
  0x16   :  { %819 = vmatmul.mubr.msk.f32.gmra.mxu1 %vm114_vm0, %v72_v18  ;;  %p937_p3 = por %p936_p2, %p935_p1 }
  0x17   :  { %901 = vset.pattern.permute.xlu1 %v976_v15  ;;  %829 = vmatprep.mubr.msk.f32.mxu1 %vm33_vm1, %v296_v25 }
  0x18   :  { %249 = vperm.xlu1 %901, %v83_v11   ;;  %902 = vset.pattern.permute.xlu0 %v977_v19  ;;  %p938_p4 = pnand %p937_p3, %p931_p0 }
  0x19   :  { %281 = vperm.xlu0 %902, %v84_v7  }
  0x1c   :  { %903 = vset.pattern.permute.xlu1 %v974_v2 }
  0x1d   :  { %213 = vperm.xlu1 %903, %v81_v17   ;;  %277 = vperm.xlu0 %902, %v83_v11  }
  0x21   :  { %904 = vset.pattern.permute.xlu1 %v976_v15  ;;  %273 = vperm.xlu0 %902, %v82_v9  }
  0x22   :  { %245 = vperm.xlu1 %904, %v82_v9  }
  0x25   :  { %53 = vrot.lane.b32.xlu0 %v739_v20, %s978_s1 }
  0x26   :  { %241 = vperm.xlu1 %904, %v81_v17  }
  0x29   :  { %64 = vrot.lane.b32.xlu0 %v741_v26, %s978_s1 }
  0x2a   :  { %905 = vset.pattern.permute.xlu1 %v977_v19 }
  0x2b   :  { %269 = vperm.xlu1 %905, %v81_v17  }
  0x2f   :  { %55 = vrot.lane.b32.xlu1 %v740_v21, %s978_s1 }
  0x7f   :  { %v226_v27 = vpop.permute.xlu1 %225 }
  0x80   :  { %v104_v28 = vpop.permute.xlu0 %103  ;;  %v235_v4 = vmul.f32 %v231_v53, %v226_v27 }
  0x81   :  { %v113_v62 = vmul.f32 %v109_v50, %v104_v28 }
  0x84   :  { %v94_v29 = vpop.permute.xlu1 %93 }
  0x85   :  { %v99_v30 = vpop.permute.xlu0 %98  ;;  %v111_v54 = vmul.f32 %v109_v50, %v94_v29  ;;  %v297_v29 = vld [vmem:[#allocation2 + $0x8] sm:$0xff] }
  0x86   :  { %v112_v6 = vmul.f32 %v109_v50, %v99_v30 }
  0x89   :  { %v254_v31 = vpop.permute.xlu1 %253 }
  0x8a   :  { %v263_v10 = vmul.f32 %v259_v55, %v254_v31 }
  0x8b   :  { %v222_v32 = vpop.permute.xlu0 %221 }
  0x8c   :  { %v234_v12 = vmul.f32 %v231_v53, %v222_v32 }
  0x8e   :  { %v89_v33 = vpop.permute.xlu1 %88 }
  0x8f   :  { %v218_v34 = vpop.permute.xlu0 %217  ;;  %v110_v58 = vmul.f32 %v109_v50, %v89_v33  ;;  %v45_v33 = vld [vmem:[%s1229_s2 + $0xf] sm:$0x1] }
  0x90   :  { %v233_v59 = vmul.f32 %v231_v53, %v218_v34  ;;  %47 = vst.msk [vmem:[#allocation3] sm:$0x1] %vm46_vm6, %v45_v33  ;;  %v517_v34 = vld [vmem:[%s1233_s6 + $0x78] sm:$0xff] }
  0x91   :  { %847 = vmatpush3.msra.mxu0 %v517_v34 }
  0x92   :  { %848 = vmatprep.subr.mxu0 %v979_v22 }
  0x93   :  { %v250_v35 = vpop.permute.xlu1 %249 }
  0x94   :  { %v282_v36 = vpop.permute.xlu0 %281  ;;  %v262_v16 = vmul.f32 %v259_v55, %v250_v35  ;;  %v516_v35 = vld [vmem:[%s1233_s6 + $0x70] sm:$0xff] }
  0x95   :  { %v291_v17 = vmul.f32 %v287_v56, %v282_v36  ;;  %v515_v36 = vld [vmem:[%s1233_s6 + $0x68] sm:$0xff]  ;;  %849 = vmatpush3.msra.mxu0 %v516_v35 }
  0x96   :  { %850 = vmatprep.subr.mxu0 %v979_v22 }
  0x97   :  { %851 = vmatpush3.msra.mxu0 %v515_v36 }
  0x98   :  { %v214_v37 = vpop.permute.xlu1 %213  ;;  %v278_v38 = vpop.permute.xlu0 %277  ;;  %852 = vmatprep.subr.mxu0 %v979_v22 }
  0x99   :  { %v232_v0 = vmul.f32 %v231_v53, %v214_v37  ;;  %v290_v21 = vmul.f32 %v287_v56, %v278_v38  ;;  %v514_v37 = vld [vmem:[%s1233_s6 + $0x60] sm:$0xff]  ;;  %v513_v38 = vld [vmem:[%s1233_s6 + $0x58] sm:$0xff] }
  0x9a   :  { %853 = vmatpush3.msra.mxu0 %v514_v37 }
  0x9b   :  { %854 = vmatprep.subr.mxu0 %v979_v22 }
  0x9c   :  { %v274_v39 = vpop.permute.xlu0 %273  ;;  %855 = vmatpush3.msra.mxu0 %v513_v38 }
  0x9d   :  { %v246_v40 = vpop.permute.xlu1 %245  ;;  %v289_v3 = vmul.f32 %v287_v56, %v274_v39  ;;  %v512_v39 = vld [vmem:[%s1233_s6 + $0x50] sm:$0xff]  ;;  %856 = vmatprep.subr.mxu0 %v979_v22 }
  0x9e   :  { %v261_v60 = vmul.f32 %v259_v55, %v246_v40  ;;  %v511_v40 = vld [vmem:[%s1233_s6 + $0x48] sm:$0xff]  ;;  %857 = vmatpush3.msra.mxu0 %v512_v39 }
  0x9f   :  { %858 = vmatprep.subr.mxu0 %v979_v22 }
  0xa0   :  { %v54_v41 = vpop.permute.xlu0 %53  ;;  %859 = vmatpush3.msra.mxu0 %v511_v40 }
  0xa1   :  { %v242_v42 = vpop.permute.xlu1 %241  ;;  %60 = vst.msk [vmem:[#allocation2 + $0x10] sm:$0xff] %vm59_vm3, %v54_v41  ;;  %v510_v41 = vld [vmem:[%s1233_s6 + $0x40] sm:$0xff]  ;;  %860 = vmatprep.subr.mxu0 %v979_v22 }
  0xa2   :  { %v260_v18 = vmul.f32 %v259_v55, %v242_v42  ;;  %v509_v42 = vld [vmem:[%s1233_s6 + $0x38] sm:$0xff]  ;;  %861 = vmatpush3.msra.mxu0 %v510_v41 }
  0xa3   :  { %862 = vmatprep.subr.mxu0 %v979_v22 }
  0xa4   :  { %v65_v32 = vpop.permute.xlu0 %64  ;;  %863 = vmatpush3.msra.mxu0 %v509_v42 }
  0xa5   :  { %68 = vst.msk [vmem:[#allocation3 + $0x1] sm:$0x1] %vm67_vm4, %v65_v32  ;;  %864 = vmatprep.subr.mxu0 %v979_v22 }
  0xa6   :  { %v270_v43 = vpop.permute.xlu1 %269 }
  0xa7   :  { %v288_v26 = vmul.f32 %v287_v56, %v270_v43  ;;  %v508_v43 = vld [vmem:[%s1233_s6 + $0x30] sm:$0xff] }
  0xa8   :  { %v298_v30 = vld [vmem:[#allocation2 + $0x10] sm:$0xff]  ;;  %865 = vmatpush3.msra.mxu0 %v508_v43 }
  0xa9   :  { %866 = vmatprep.subr.mxu0 %v979_v22 }
  0xaa   :  { %v56_v44 = vpop.permute.xlu1 %55 }
  0xab   :  { %61 = vst.msk [vmem:[#allocation2 + $0x18] sm:$0xff] %vm59_vm3, %v56_v44  ;;  %v507_v44 = vld [vmem:[%s1233_s6 + $0x28] sm:$0xff] }
  0xac   :  { %867 = vmatpush3.msra.mxu0 %v507_v44 }
  0xad   :  { %868 = vmatprep.subr.mxu0 %v979_v22 }
  0xae   :  { %869 = vmatpush3.msra.mxu0 %v506_v45 }
  0xaf   :  { %870 = vmatprep.subr.mxu0 %v979_v22 }
  0xb0   :  { %871 = vmatpush3.msra.mxu0 %v505_v46 }
  0xb1   :  { %872 = vmatprep.subr.mxu0 %v979_v22 }
  0xb2   :  { %v299_v31 = vld [vmem:[#allocation2 + $0x18] sm:$0xff]  ;;  %873 = vmatpush3.msra.mxu0 %v504_v47 }
  0xb3   :  { %874 = vmatprep.subr.mxu0 %v979_v22 }
  0xb4   :  { %875 = vmatpush3.msra.mxu0 %v503_v48 }
  0xb5   :  { %876 = vmatprep.subr.mxu0 %v979_v22 }
  0xd2   :  { %v817_v57 = vpop.f32.mrf.mxu1 }
  0xd3   :  { %v199_v61 = vadd.f32 %v817_v57, %v111_v54 }
  0xd4   :  { %v193_v63 = vpop.f32.mrf.mxu1 }
  0xd5   :  { %v237_v1 = vadd.f32 %v233_v59, %v199_v61  ;;  %v194_v2 = vadd.f32 %v193_v63, %v110_v58 }
  0xd6   :  { %v820_v5 = vpop.f32.mrf.mxu1 }
  0xd7   :  { %v236_v7 = vadd.f32 %v232_v0, %v194_v2  ;;  %v265_v8 = vadd.f32 %v261_v60, %v237_v1  ;;  %v209_v9 = vadd.f32 %v820_v5, %v113_v62 }
  0xd8   :  { %v203_v11 = vpop.f32.mrf.mxu1 }
  0xd9   :  { %v293_v13 = vadd.f32 %v289_v3, %v265_v8  ;;  %v239_v14 = vadd.f32 %v235_v4, %v209_v9  ;;  %v204_v15 = vadd.f32 %v203_v11, %v112_v6  ;;  %v264_v25 = vadd.f32 %v260_v18, %v236_v7  ;;  %v756_v18 = vld [vmem:[%s1234_s7] ss:$0 sm:$0xff]  ;;  %s982_s7 = smov 120  }
  0xdb   :  { %v267_v19 = vadd.f32 %v263_v10, %v239_v14  ;;  %v238_v20 = vadd.f32 %v234_v12, %v204_v15  ;;  %v292_v28 = vadd.f32 %v288_v26, %v264_v25  ;;  %v502_v15 = vld [vmem:[%s1233_s6] sm:$0xff]  ;;  %s981_s6 = smov 112  }
  0xdc   :  { %877 = vmatpush3.msra.mxu0 %v502_v15 }
  0xdd   :  { %v266_v23 = vadd.f32 %v262_v16, %v238_v20  ;;  %v295_v24 = vadd.f32 %v291_v17, %v267_v19 }
  0xdf   :  { %821 = vmatprep.subr.mxu1 %v295_v24  ;;  %v294_v27 = vadd.f32 %v290_v21, %v266_v23 }
  0xe0   :  { %822 = vmatpush3.msra.mxu1 %v295_v24 }
  0xe1   :  { %823 = vmatprep.subr.mxu1 %v294_v27 }
  0xe2   :  { %824 = vmatpush3.msra.mxu1 %v294_v27 }
  0xe3   :  { %825 = vmatprep.subr.mxu1 %v293_v13 }
  0xe4   :  { %826 = vmatpush3.msra.mxu1 %v293_v13  ;;  %v428_v13 = vld [vmem:[#allocation3] sm:$0x3] }
  0xe5   :  { %827 = vmatprep.subr.mxu1 %v292_v28 }
  0xe6   :  { %828 = vmatpush3.msra.mxu1 %v292_v28 }
  0xe7   :  { %830 = vmatmul.mubr.msk.f32.vlgmr.msra.gmra.mxu1 %vm33_vm1, %v297_v29  ;;  %835 = vmatprep.subr.mxu1 %v979_v22 }
  0xe8   :  { %832 = vmatprep.mubr.msk.f32.mxu1 %vm33_vm1, %v298_v30 }
  0xeb   :  { %833 = vmatmul.mubr.msk.f32.gmra.mxu1 %vm33_vm1, %v299_v31 }
  0xec   :  { %843 = vmatprep.mubr.msk.f32.mxu1 %vm980_vm7, %v979_v22 }
 0x1a7   :  { %v831_v50 = vpop.f32.mrf.mxu1 }
 0x1a8   :  { %v391_v51 = vadd.f32 %v831_v50, %v746_v49 }
 0x1a9   :  { %v385_v52 = vpop.f32.mrf.mxu1 }
 0x1aa   :  { %v386_v53 = vadd.f32 %v746_v49, %v385_v52  ;;  %v409_v54 = vmin.f32 %v391_v51, 0.0  ;;  %vm405_vm10 = vcmp.gt.f32.partialorder %v391_v51, 0.0 }
 0x1ab   :  { %v834_v55 = vpop.f32.mrf.mxu1 }
 0x1ac   :  { %v408_v56 = vmin.f32 %v386_v53, 0.0  ;;  %v401_v57 = vadd.f32 %v834_v55, %v746_v49  ;;  %v414_v60 = vmul.f32 1.442695, %v409_v54  ;;  %vm404_vm11 = vcmp.gt.f32.partialorder %v386_v53, 0.0 }
 0x1ad   :  { %v395_v58 = vpop.f32.mrf.mxu1 }
 0x1ae   :  { %v411_v59 = vmin.f32 %v401_v57, 0.0  ;;  %v396_v61 = vadd.f32 %v746_v49, %v395_v58  ;;  %v412_v62 = vmul.f32 1.442695, %v408_v56  ;;  %vm407_vm8 = vcmp.gt.f32.partialorder %v401_v57, 0.0 }
 0x1b0   :  { %v418_v63 = vmul.f32 1.442695, %v411_v59  ;;  %v410_v0 = vmin.f32 %v396_v61, 0.0  ;;  %vm406_vm9 = vcmp.gt.f32.partialorder %v396_v61, 0.0 }
 0x1b2   :  { %906 = vpow2.f32 %v418_v63  ;;  %v416_v1 = vmul.f32 1.442695, %v410_v0 }
 0x1b3   :  { %908 = vpow2.f32 %v414_v60 }
 0x1b4   :  { %910 = vpow2.f32 %v412_v62 }
 0x1b5   :  { %912 = vpow2.f32 %v416_v1 }
 0x1bf   :  { %v907_v2 = vpop.eup %906 }
 0x1c0   :  { %v909_v3 = vpop.eup %908  ;;  %v754_v4 = vadd.f32 -1.0, %v907_v2 }
 0x1c1   :  { %v911_v5 = vpop.eup %910  ;;  %v752_v9 = vadd.f32 -1.0, %v909_v3 }
 0x1c2   :  { %v913_v6 = vpop.eup %912  ;;  %v427_v7 = vsel %vm407_vm8, %v401_v57, %v754_v4  ;;  %v751_v11 = vadd.f32 -1.0, %v911_v5 }
 0x1c3   :  { %836 = vmatpush3.msra.mxu1 %v427_v7  ;;  %v753_v8 = vadd.f32 -1.0, %v913_v6  ;;  %v425_v12 = vsel %vm405_vm10, %v391_v51, %v752_v9 }
 0x1c4   :  { %837 = vmatprep.subr.mxu1 %v979_v22  ;;  %v424_v14 = vsel %vm404_vm11, %v386_v53, %v751_v11 }
 0x1c5   :  { %v426_v10 = vsel %vm406_vm9, %v396_v61, %v753_v8 }
 0x1c6   :  { %838 = vmatpush3.msra.mxu1 %v426_v10 }
 0x1c7   :  { %839 = vmatprep.subr.mxu1 %v979_v22 }
 0x1c8   :  { %840 = vmatpush3.msra.mxu1 %v425_v12 }
 0x1c9   :  { %841 = vmatprep.subr.mxu1 %v979_v22 }
 0x1ca   :  { %842 = vmatpush3.msra.mxu1 %v424_v14 }
 0x1cb   :  { %844 = vmatmul.mubr.msk.f32.vlgmr.msra.gmra.mxu1 %vm33_vm1, %v428_v13 }
 0x28b   :  { %v498_v16 = vpop.f32.mrf.mxu1 }
 0x28c   :  { %879 = vmatmul.mubr.f32.vlgmr.msra.gmra.mxu0 %v498_v16 }
 0x28d   :  { %v845_v17 = vpop.f32.mrf.mxu1 }
 0x34c   :  { %v591_v19 = vpop.f32.mrf.mxu0 }
 0x34d   :  { %v592_v22 = vadd.f32 %v756_v18, %v591_v19 }
 0x34e   :  { %v880_v20 = vpop.f32.mrf.mxu0 }
 0x34f   :  { %v626_v21 = vsel %vm625_vm12, %v592_v22, -inf  ;;  %v609_v23 = vsel %vm608_vm13, %v592_v22, -inf  ;;  %v643_v24 = vsel %vm642_vm14, %v592_v22, -inf  ;;  %v596_v37 = vsel %vm595_vm15, %v592_v22, -inf }
 0x350   :  { %627 = vmax.xlane.f32.xlu0 %v626_v21  ;;  %610 = vmax.xlane.f32.xlu1 %v609_v23 }
 0x354   :  { %644 = vmax.xlane.f32.xlu0 %v643_v24 }
 0x3d9   :  { %v628_v25 = vpop.xlane.xlu0 %627  ;;  %v611_v26 = vpop.xlane.xlu1 %610 }
 0x3da   :  { %v629_v27 = vsub.f32 %v592_v22, %v628_v25  ;;  %v612_v28 = vsub.f32 %v592_v22, %v611_v26 }
 0x3dc   :  { %v630_v29 = vmul.f32 1.442695, %v629_v27  ;;  %v613_v30 = vmul.f32 1.442695, %v612_v28 }
 0x3dd   :  { %v645_v31 = vpop.xlane.xlu0 %644 }
 0x3de   :  { %914 = vpow2.f32 %v630_v29  ;;  %v646_v32 = vsub.f32 %v592_v22, %v645_v31 }
 0x3df   :  { %916 = vpow2.f32 %v613_v30 }
 0x3e0   :  { %v647_v33 = vmul.f32 1.442695, %v646_v32 }
 0x3e2   :  { %918 = vpow2.f32 %v647_v33 }
 0x3eb   :  { %v915_v34 = vpop.eup %914 }
 0x3ec   :  { %v917_v35 = vpop.eup %916  ;;  %633 = vrot.lane.b32.xlu0 %v915_v34, %s981_s6 }
 0x3ed   :  { %616 = vrot.lane.b32.xlu1 %v917_v35, %s982_s7 }
 0x3ef   :  { %v919_v36 = vpop.eup %918 }
 0x3f1   :  { %650 = vrot.lane.b32.xlu1 %v919_v36, %s983_s18 }
 0x415   :  { %597 = vmax.xlane.f32.xlu1 %v596_v37 }
 0x45e   :  { %v634_v40 = vpop.permute.xlu0 %633 }
 0x45f   :  { %v617_v38 = vpop.permute.xlu1 %616  ;;  %v636_v42 = vsel %vm595_vm15, %v634_v40, 0.0 }
 0x460   :  { %v619_v39 = vsel %vm595_vm15, %v617_v38, 0.0 }
 0x461   :  { %620 = vadd.xlane.f32.xlu0 %v619_v39 }
 0x463   :  { %v651_v41 = vpop.permute.xlu1 %650 }
 0x464   :  { %v653_v43 = vsel %vm595_vm15, %v651_v41, 0.0 }
 0x465   :  { %637 = vadd.xlane.f32.xlu0 %v636_v42  ;;  %654 = vadd.xlane.f32.xlu1 %v653_v43 }
 0x49e   :  { %v598_v44 = vpop.xlane.xlu1 %597 }
 0x49f   :  { %v599_v45 = vsub.f32 %v592_v22, %v598_v44 }
 0x4a1   :  { %v600_v46 = vmul.f32 1.442695, %v599_v45 }
 0x4a3   :  { %920 = vpow2.f32 %v600_v46 }
 0x4b0   :  { %v921_v47 = vpop.eup %920 }
 0x4b1   :  { %v602_v48 = vsel %vm595_vm15, %v921_v47, 0.0 }
 0x4b2   :  { %603 = vadd.xlane.f32.xlu0 %v602_v48 }
 0x4ea   :  { %v621_v49 = vpop.xlane.xlu0 %620 }
 0x4eb   :  { %922 = vlog2.f32 %v621_v49 }
 0x4ee   :  { %v638_v50 = vpop.xlane.xlu0 %637  ;;  %v655_v51 = vpop.xlane.xlu1 %654 }
 0x4ef   :  { %924 = vlog2.f32 %v638_v50 }
 0x4f0   :  { %926 = vlog2.f32 %v655_v51 }
 0x4f8   :  { %v923_v52 = vpop.eup %922 }
 0x4f9   :  { %v623_v53 = vmul.f32 0.6931472, %v923_v52 }
 0x4fb   :  { %v624_v54 = vsub.f32 %v612_v28, %v623_v53 }
 0x4fc   :  { %v925_v55 = vpop.eup %924 }
 0x4fd   :  { %v927_v56 = vpop.eup %926  ;;  %v640_v57 = vmul.f32 0.6931472, %v925_v55  ;;  %660 = vrot.lane.b32.xlu1 %v624_v54, %s982_s7 }
 0x4fe   :  { %v657_v58 = vmul.f32 0.6931472, %v927_v56 }
 0x4ff   :  { %v641_v59 = vsub.f32 %v629_v27, %v640_v57 }
 0x500   :  { %v658_v60 = vsub.f32 %v646_v32, %v657_v58 }
 0x501   :  { %665 = vrot.lane.b32.xlu0 %v641_v59, %s981_s6 }
 0x502   :  { %670 = vrot.lane.b32.xlu1 %v658_v60, %s983_s18 }
 0x53b   :  { %v604_v61 = vpop.xlane.xlu0 %603 }
 0x53c   :  { %928 = vlog2.f32 %v604_v61 }
 0x549   :  { %v929_v62 = vpop.eup %928 }
 0x54a   :  { %v606_v63 = vmul.f32 0.6931472, %v929_v62 }
 0x54c   :  { %v607_v1 = vsub.f32 %v599_v45, %v606_v63 }
 0x56f   :  { %v661_v0 = vpop.permute.xlu1 %660 }
 0x570   :  { %v663_v2 = vadd.f32 %v661_v0, %v607_v1 }
 0x573   :  { %v666_v3 = vpop.permute.xlu0 %665 }
 0x574   :  { %v668_v4 = vadd.f32 %v666_v3, %v663_v2  ;;  %v671_v5 = vpop.permute.xlu1 %670 }
 0x576   :  { %v673_v6 = vadd.f32 %v671_v5, %v668_v4 }
 0x578   :  { %v674_v7 = vmul.f32 0.25, %v673_v6 }
 0x57a   :  { %709 = vst.msk [vmem:[#allocation4] sm:$0x3] %vm595_vm15, %v674_v7  ;;  %688 = vrot.lane.b32.xlu0 %v674_v7, %s978_s1  ;;  %678 = vrot.lane.b32.xlu1 %v674_v7, %s984_s0  ;;  %v675_v8 = vsub.f32 %v607_v1, %v674_v7 }
 0x57e   :  { %698 = vrot.lane.b32.xlu1 %v674_v7, %s985_s19 }
 0x5ec   :  { %v689_v9 = vpop.permute.xlu0 %688  ;;  %v679_v10 = vpop.permute.xlu1 %678 }
 0x5ed   :  { %v691_v11 = vsub.f32 %v641_v59, %v689_v9  ;;  %v681_v12 = vsub.f32 %v624_v54, %v679_v10 }
 0x5ee   :  { %941 = shalt.err (!%p938_p4)
}
 0x5ef   :  { %720 = dma.vmem_to_hbm [thread:$0]  %s718_s21, 32, %s1235_s8, [#allocation5]   ;;  %v692_v13 = vmul.f32 %v691_v11, %v691_v11  ;;  %v682_v14 = vmul.f32 %v681_v12, %v681_v12  ;;  %v676_v18 = vmul.f32 %v675_v8, %v675_v8 }
 0x5f0   :  { %v699_v15 = vpop.permute.xlu1 %698  ;;  %s987_s24 = smov [#allocation6]  }
 0x5f1   :  { %v701_v16 = vsub.f32 %v658_v60, %v699_v15  ;;  %694 = vrot.lane.b32.xlu1 %v692_v13, %s981_s6  ;;  %684 = vrot.lane.b32.xlu0 %v682_v14, %s982_s7  ;;  %s727_s25 = sshll.u32 %s987_s24, 4  ;;  %s728_s25 = int_to_ptr.vmem [resolvable:$true] %s727_s25 }
 0x5f2   :  { %s950_s8 = scalar_lea.vmem %s728_s25, 32  ;;  %p955_p6 = scmp.lt.s32.totalorder %s728_s25, %s728_s25 }
 0x5f3   :  { %v702_v17 = vmul.f32 %v701_v16, %v701_v16  ;;  %p951_p5 = scmp.ne.s32.totalorder %s728_s25, %s950_s8  ;;  %p956_p7 = scmp.lt.s32.totalorder %s950_s8, %s950_s8 }
 0x5f5   :  { %704 = vrot.lane.b32.xlu0 %v702_v17, %s983_s18  ;;  %p957_p8 = por %p956_p7, %p955_p6 }
 0x5f7   :  { %p958_p9 = pnand %p957_p8, %p951_p5 }
 0x663   :  { %v685_v19 = vpop.permute.xlu0 %684  ;;  %v695_v20 = vpop.permute.xlu1 %694 }
 0x664   :  { %v687_v22 = vadd.f32 %v685_v19, %v676_v18 }
 0x666   :  { %v697_v21 = vadd.f32 %v695_v20, %v687_v22 }
 0x667   :  { %v705_v23 = vpop.permute.xlu0 %704 }
 0x668   :  { %v707_v24 = vadd.f32 %v705_v23, %v697_v21 }
 0x66a   :  { %v708_v25 = vmul.f32 0.25, %v707_v24 }
 0x66c   :  { %710 = vst.msk [vmem:[#allocation6] sm:$0x3] %vm595_vm15, %v708_v25 }
 0x66d   :  { %961 = shalt.err (!%p958_p9)
}
 0x66e   :  { %730 = dma.vmem_to_hbm [thread:$0]  %s728_s25, 32, %s1236_s9, [#allocation7]  }
 0x66f   :  { %970 = dma.done.wait [#allocation5], 32  }
 0x670   :  { %971 = vsyncadd [#allocation5], 4294967264 }
 0x671   :  { %972 = dma.done.wait [#allocation7], 32  }
 0x672   :  { %973 = vsyncadd [#allocation7], 4294967264 }
 0x673   :  { %737 = vsyncpa [#allocation5], 1 }
 0x674   :  { %738 = vsyncpa [#allocation7], 1 }

</bundles_post_ra>
